<compile_context>
chip_gen: v7x
topology: tpu7x:2x2x1
jax: 0.10.0
libtpu: 0.0.40
codegen_flags: <defaults>
</compile_context>

<pallas_src>
import functools

import jax
import jax.numpy as jnp
from jax.experimental import pallas as pl
from jax.experimental.pallas import tpu as pltpu


LANE = 128      # feature (last) dims padded to this -> lane-dense stores, full MXU tiles
TILE_M = 256    # node-row tile for aggregation (A_hat rows / output rows)
TILE_K = 512    # A_hat column (reduction) tile; falls back to TILE_M if not divisible
SMALL_N = 256   # graphs with <= this many nodes use the fused full-block path


def _round_up(x, m):
    return ((x + m - 1) // m) * m


def _pad2(x, rows, cols, dtype):
    """Zero-pad a 2-D array to (rows, cols), constructed directly in `dtype`."""
    x = x.astype(dtype)
    return jnp.pad(x, ((0, rows - x.shape[0]), (0, cols - x.shape[1])))


def _vmem_limit_bytes():
    """Scoped-VMEM budget: physical VMEM minus ~16 MiB headroom, capped at 112 MiB
    (=> ~48 MiB on v7x's 64 MiB/TC, ~112 MiB on v5e/v6e's 128 MiB)."""
    try:
        cap = pltpu.get_tpu_info().vmem_capacity_bytes
    except Exception:
        cap = 64 * 1024 * 1024
    return int(min(max(cap - 16 * 1024 * 1024, 32 * 1024 * 1024), 112 * 1024 * 1024))


# --------------------------------------------------------------------------- #
# Tiled path (large graphs): transform kernel + aggregation kernel per layer.
# --------------------------------------------------------------------------- #

def transform_kernel(x_ref, w_ref, o_ref):
    """XW row-tile: o = X_tile @ W   (bf16 x bf16 -> f32 on MXU, stored bf16)."""
    o_ref[...] = jnp.dot(x_ref[...], w_ref[...],
                         preferred_element_type=jnp.float32).astype(o_ref.dtype)


def transform(x, w, *, tm):
    """x: [Np, Fp] bf16, w: [Fp, Hp] bf16 -> XW [Np, Hp] bf16 (no bias)."""
    n, f = x.shape
    h = w.shape[1]
    return pl.pallas_call(
        transform_kernel,
        out_shape=jax.ShapeDtypeStruct((n, h), jnp.bfloat16),
        grid_spec=pltpu.PrefetchScalarGridSpec(
            num_scalar_prefetch=0,
            grid=(n // tm,),
            in_specs=[
                pl.BlockSpec((tm, f), lambda i: (i, 0)),   # X row tile (streamed)
                pl.BlockSpec((f, h), lambda i: (0, 0)),    # W resident
            ],
            out_specs=pl.BlockSpec((tm, h), lambda i: (i, 0)),
        ),
        compiler_params=pltpu.CompilerParams(
            dimension_semantics=("parallel",),
            vmem_limit_bytes=_vmem_limit_bytes(),
        ),
    )(x, w)


def aggregate_kernel(a_ref, xw_ref, b_ref, o_ref, *scratch, apply_relu, tk):
    """out_tile = A_hat[i, :] @ XW + b  (optional ReLU).

    Grid = (row_tiles, col_tiles); axis 1 reduces over A_hat columns.  XW is a
    fully VMEM-resident operand (constant block index) sliced per-k.  f32
    outputs accumulate directly into the resident output block (no scratch);
    bf16 outputs use an f32 scratch accumulator.
    """
    acc_ref = scratch[0] if scratch else o_ref
    k = pl.program_id(1)

    @pl.when(k == 0)
    def _init():
        acc_ref[...] = jnp.zeros_like(acc_ref)

    off = pl.multiple_of(k * tk, tk)
    acc_ref[...] += jnp.dot(a_ref[...], xw_ref[pl.ds(off, tk), :],
                            preferred_element_type=jnp.float32)

    @pl.when(k == pl.num_programs(1) - 1)
    def _finalize():
        y = acc_ref[...] + b_ref[...]
        if apply_relu:
            y = jnp.maximum(y, 0.0)
        o_ref[...] = y.astype(o_ref.dtype)


def aggregate(a_hat, xw, b, *, apply_relu, out_dtype, tm, tk):
    """a_hat: [Np, Np] bf16, xw: [Np, Hp] bf16, b: [1, Hp] f32 -> [Np, Hp] out_dtype."""
    n = a_hat.shape[0]
    h = xw.shape[1]
    use_scratch = out_dtype != jnp.float32
    scratch_shapes = [pltpu.VMEM((tm, h), jnp.float32)] if use_scratch else []
    return pl.pallas_call(
        functools.partial(aggregate_kernel, apply_relu=apply_relu, tk=tk),
        out_shape=jax.ShapeDtypeStruct((n, h), out_dtype),
        grid_spec=pltpu.PrefetchScalarGridSpec(
            num_scalar_prefetch=0,
            grid=(n // tm, n // tk),
            in_specs=[
                pl.BlockSpec((tm, tk), lambda i, k: (i, k)),   # A_hat tile (streamed)
                pl.BlockSpec((n, h), lambda i, k: (0, 0)),     # XW resident in VMEM
                pl.BlockSpec((1, h), lambda i, k: (0, 0)),     # bias resident
            ],
            out_specs=pl.BlockSpec((tm, h), lambda i, k: (i, 0)),
            scratch_shapes=scratch_shapes,
        ),
        compiler_params=pltpu.CompilerParams(
            dimension_semantics=("parallel", "arbitrary"),
            vmem_limit_bytes=_vmem_limit_bytes(),
        ),
    )(a_hat, xw, b)


# --------------------------------------------------------------------------- #
# Small-graph path: one fused full-block kernel for both layers.
# --------------------------------------------------------------------------- #

def gnn_fused_kernel(a_ref, x_ref, w1_ref, b1_ref, w2_ref, b2_ref, o_ref):
    """Whole 2-layer GCN for small graphs; every operand is a full-array VMEM block."""
    bf = jnp.bfloat16
    xw1 = jnp.dot(x_ref[...], w1_ref[...], preferred_element_type=jnp.float32)
    h1 = jnp.dot(a_ref[...], xw1.astype(bf), preferred_element_type=jnp.float32)
    h1 = jnp.maximum(h1 + b1_ref[...], 0.0).astype(bf)
    # TODO(synk): F.dropout(training=True) would use pltpu.prng_seed/prng_random_bits;
    # it is the identity in eval mode.
    xw2 = jnp.dot(h1, w2_ref[...], preferred_element_type=jnp.float32)
    o_ref[...] = (jnp.dot(a_ref[...], xw2.astype(bf),
                          preferred_element_type=jnp.float32) + b2_ref[...])


# --------------------------------------------------------------------------- #
# Forward wrapper.
# --------------------------------------------------------------------------- #

def gnn_forward(a_hat, x, w1, b1, w2, b2):
    """2-layer GCN forward (eval mode). Feature dims padded to 128 lanes; node dim
    padded to 16 (small path, full blocks) or to the row-tile size (tiled path)."""
    n, f = x.shape
    h1 = w1.shape[1]
    h2 = w2.shape[1]
    bf16 = jnp.bfloat16

    f_pad = _round_up(f, LANE)
    h1_pad = _round_up(h1, LANE)
    h2_pad = _round_up(h2, LANE)

    if n <= SMALL_N:
        # Small-graph path: no 128-node padding (full-array blocks are exempt
        # from the (8,128) divisibility rule) -> no 64x FLOP/DMA inflation.
        n_pad = _round_up(n, 16)
        a_p = _pad2(a_hat, n_pad, n_pad, bf16)
        x_p = _pad2(x, n_pad, f_pad, bf16)
        w1_p = _pad2(w1, f_pad, h1_pad, bf16)
        b1_p = _pad2(b1, 1, h1_pad, jnp.float32)
        w2_p = _pad2(w2, h1_pad, h2_pad, bf16)
        b2_p = _pad2(b2, 1, h2_pad, jnp.float32)
        y = pl.pallas_call(
            gnn_fused_kernel,
            out_shape=jax.ShapeDtypeStruct((n_pad, h2_pad), jnp.float32),
        )(a_p, x_p, w1_p, b1_p, w2_p, b2_p)
        return y[:n, :h2]

    # Tiled path.
    tm = TILE_M
    n_pad = _round_up(n, tm)
    tk = TILE_K if n_pad % TILE_K == 0 else tm

    a_p = _pad2(a_hat, n_pad, n_pad, bf16)
    x_p = _pad2(x, n_pad, f_pad, bf16)
    w1_p = _pad2(w1, f_pad, h1_pad, bf16)
    b1_p = _pad2(b1, 1, h1_pad, jnp.float32)
    w2_p = _pad2(w2, h1_pad, h2_pad, bf16)
    b2_p = _pad2(b2, 1, h2_pad, jnp.float32)

    # Layer 1: XW1 computed once, aggregation consumes it resident; bf16 output
    # (it is consumed in bf16 by layer 2 anyway -> no extra f32 pass over HBM).
    xw1 = transform(x_p, w1_p, tm=tm)
    h1_b = aggregate(a_p, xw1, b1_p, apply_relu=True, out_dtype=bf16, tm=tm, tk=tk)
    # TODO(synk): dropout — identity in eval mode.

    # Layer 2: f32 output, accumulated directly into the resident output block.
    xw2 = transform(h1_b, w2_p, tm=tm)
    y = aggregate(a_p, xw2, b2_p, apply_relu=False, out_dtype=jnp.float32,
                  tm=tm, tk=tk)
    return y[:n, :h2]


# --------------------------------------------------------------------------- #
# Graph normalization + references.
# --------------------------------------------------------------------------- #

def gcn_norm_dense(edge_index, num_nodes):
    """Dense normalized adjacency A_hat[dst, src] = d_src^-1/2 * d_dst^-1/2 with
    self-loops (matches GCNConv's gcn_norm with edge_weight=1)."""
    src, dst = edge_index[0], edge_index[1]
    loops = jnp.arange(num_nodes, dtype=src.dtype)
    src = jnp.concatenate([src, loops])
    dst = jnp.concatenate([dst, loops])
    deg = jnp.zeros((num_nodes,), jnp.float32).at[dst].add(1.0)
    dinv = jnp.where(deg > 0, 1.0 / jnp.sqrt(deg), 0.0)
    norm = dinv[src] * dinv[dst]
    return jnp.zeros((num_nodes, num_nodes), jnp.float32).at[dst, src].add(norm)


def reference_forward_bf16(a_hat, x, w1, b1, w2, b2):
    """Pure-JAX reference mirroring the kernels' bf16-operand / f32-accum numerics."""
    bf16 = jnp.bfloat16

    def layer(a, xx, w, b, relu):
        xw = jnp.dot(xx.astype(bf16), w.astype(bf16),
                     preferred_element_type=jnp.float32)
        y = jnp.dot(a.astype(bf16), xw.astype(bf16),
                    preferred_element_type=jnp.float32) + b
        return jnp.maximum(y, 0.0) if relu else y

    h = layer(a_hat, x, w1, b1, True)
    return layer(a_hat, h, w2, b2, False)


def reference_forward_f32(a_hat, x, w1, b1, w2, b2):
    h = jnp.maximum(a_hat @ (x @ w1) + b1, 0.0)
    return a_hat @ (h @ w2) + b2


if __name__ == "__main__":
    key = jax.random.PRNGKey(0)

    def glorot(k, shape):
        fan_in, fan_out = shape
        lim = jnp.sqrt(6.0 / (fan_in + fan_out))
        return jax.random.uniform(k, shape, jnp.float32, -lim, lim)

    def ring_edge_index(n):
        edges = []
        for i in range(n):
            j = (i + 1) % n
            edges.append([i, j])
            edges.append([j, i])
        return jnp.array(edges, dtype=jnp.int32).T     # [2, E], like edge_index.t()

    (k_x, k_w1, k_b1, k_w2, k_b2,
     k_x2, k_w3, k_b3, k_w4, k_b4) = jax.random.split(key, 10)

    # ---- Case 1: module demo scale (N=16, F=8, hidden [32, 16]) -> fused path ----
    number_of_nodes = 16
    number_of_node_features = 8
    hidden_layers_dims = [32, 16]

    node_features = jax.random.normal(
        k_x, (number_of_nodes, number_of_node_features), jnp.float32)
    w1 = glorot(k_w1, (number_of_node_features, hidden_layers_dims[0]))
    b1 = jax.random.normal(k_b1, (1, hidden_layers_dims[0]), jnp.float32) * 0.01
    w2 = glorot(k_w2, (hidden_layers_dims[0], hidden_layers_dims[1]))
    b2 = jax.random.normal(k_b2, (1, hidden_layers_dims[1]), jnp.float32) * 0.01

    a_hat = gcn_norm_dense(ring_edge_index(number_of_nodes), number_of_nodes)

    out = jax.block_until_ready(gnn_forward(a_hat, node_features, w1, b1, w2, b2))
    ref_bf16 = reference_forward_bf16(a_hat, node_features, w1, b1, w2, b2)
    ref_f32 = reference_forward_f32(a_hat, node_features, w1, b1, w2, b2)
    assert out.shape == (number_of_nodes, hidden_layers_dims[1])
    assert jnp.allclose(out, ref_bf16, atol=5e-3, rtol=5e-3)
    assert jnp.allclose(out, ref_f32, atol=5e-2, rtol=5e-2)

    # ---- Case 2: larger graph (N=512) exercising the tiled transform+aggregate path ----
    n2, f2, dims2 = 512, 64, (128, 64)
    node_features2 = jax.random.normal(k_x2, (n2, f2), jnp.float32)
    w3 = glorot(k_w3, (f2, dims2[0]))
    b3 = jax.random.normal(k_b3, (1, dims2[0]), jnp.float32) * 0.01
    w4 = glorot(k_w4, (dims2[0], dims2[1]))
    b4 = jax.random.normal(k_b4, (1, dims2[1]), jnp.float32) * 0.01
    a_hat2 = gcn_norm_dense(ring_edge_index(n2), n2)

    out2 = jax.block_until_ready(gnn_forward(a_hat2, node_features2, w3, b3, w4, b4))
    ref2 = reference_forward_bf16(a_hat2, node_features2, w3, b3, w4, b4)
    assert out2.shape == (n2, dims2[1])
    assert jnp.allclose(out2, ref2, atol=1e-2, rtol=1e-2)

    print("KERNEL_OK")
</pallas_src>

<mosaic_0001>
module attributes {stable_mosaic.version = 11 : i64} {
  func.func @gnn_fused_kernel(%arg0: memref<16x16xbf16, #tpu.memory_space<vmem>>, %arg1: memref<16x128xbf16, #tpu.memory_space<vmem>>, %arg2: memref<128x128xbf16, #tpu.memory_space<vmem>>, %arg3: memref<1x128xf32, #tpu.memory_space<vmem>>, %arg4: memref<128x128xbf16, #tpu.memory_space<vmem>>, %arg5: memref<1x128xf32, #tpu.memory_space<vmem>>, %arg6: memref<16x128xf32, #tpu.memory_space<vmem>>) attributes {dimension_semantics = [], scalar_prefetch = 0 : i64, scratch_operands = 0 : i64, tpu.core_type = #tpu.core_type<tc>} {
    %c0 = arith.constant 0 : index
    %c0_0 = arith.constant 0 : index
    %0 = vector.load %arg1[%c0, %c0_0] : memref<16x128xbf16, #tpu.memory_space<vmem>>, vector<16x128xbf16>
    %c0_1 = arith.constant 0 : index
    %c0_2 = arith.constant 0 : index
    %1 = vector.load %arg2[%c0_1, %c0_2] : memref<128x128xbf16, #tpu.memory_space<vmem>>, vector<128x128xbf16>
    %cst = arith.constant dense<0.000000e+00> : vector<16x128xf32>
    %2 = tpu.matmul %0, %1, %cst {dimension_numbers = #tpu.dot_dimension_numbers<[1], [0], [0], [1], [0, 0, 1, 1], [], []>} : vector<16x128xbf16>, vector<128x128xbf16>, vector<16x128xf32> -> vector<16x128xf32>
    %c0_3 = arith.constant 0 : index
    %c0_4 = arith.constant 0 : index
    %3 = vector.load %arg0[%c0_3, %c0_4] : memref<16x16xbf16, #tpu.memory_space<vmem>>, vector<16x16xbf16>
    %4 = arith.truncf %2 : vector<16x128xf32> to vector<16x128xbf16>
    %cst_5 = arith.constant dense<0.000000e+00> : vector<16x128xf32>
    %5 = tpu.matmul %3, %4, %cst_5 {dimension_numbers = #tpu.dot_dimension_numbers<[1], [0], [0], [1], [0, 0, 1, 1], [], []>} : vector<16x16xbf16>, vector<16x128xbf16>, vector<16x128xf32> -> vector<16x128xf32>
    %c0_6 = arith.constant 0 : index
    %c0_7 = arith.constant 0 : index
    %6 = vector.load %arg3[%c0_6, %c0_7] : memref<1x128xf32, #tpu.memory_space<vmem>>, vector<1x128xf32>
    %7 = vector.broadcast %6 : vector<1x128xf32> to vector<16x128xf32>
    %8 = arith.addf %5, %7 : vector<16x128xf32>
    %cst_8 = arith.constant 0.000000e+00 : f32
    %9 = vector.broadcast %cst_8 : f32 to vector<16x128xf32>
    %10 = arith.maximumf %8, %9 : vector<16x128xf32>
    %11 = arith.truncf %10 : vector<16x128xf32> to vector<16x128xbf16>
    %c0_9 = arith.constant 0 : index
    %c0_10 = arith.constant 0 : index
    %12 = vector.load %arg4[%c0_9, %c0_10] : memref<128x128xbf16, #tpu.memory_space<vmem>>, vector<128x128xbf16>
    %cst_11 = arith.constant dense<0.000000e+00> : vector<16x128xf32>
    %13 = tpu.matmul %11, %12, %cst_11 {dimension_numbers = #tpu.dot_dimension_numbers<[1], [0], [0], [1], [0, 0, 1, 1], [], []>} : vector<16x128xbf16>, vector<128x128xbf16>, vector<16x128xf32> -> vector<16x128xf32>
    %c0_12 = arith.constant 0 : index
    %c0_13 = arith.constant 0 : index
    %14 = vector.load %arg0[%c0_12, %c0_13] : memref<16x16xbf16, #tpu.memory_space<vmem>>, vector<16x16xbf16>
    %15 = arith.truncf %13 : vector<16x128xf32> to vector<16x128xbf16>
    %cst_14 = arith.constant dense<0.000000e+00> : vector<16x128xf32>
    %16 = tpu.matmul %14, %15, %cst_14 {dimension_numbers = #tpu.dot_dimension_numbers<[1], [0], [0], [1], [0, 0, 1, 1], [], []>} : vector<16x16xbf16>, vector<16x128xbf16>, vector<16x128xf32> -> vector<16x128xf32>
    %c0_15 = arith.constant 0 : index
    %c0_16 = arith.constant 0 : index
    %17 = vector.load %arg5[%c0_15, %c0_16] : memref<1x128xf32, #tpu.memory_space<vmem>>, vector<1x128xf32>
    %18 = vector.broadcast %17 : vector<1x128xf32> to vector<16x128xf32>
    %19 = arith.addf %16, %18 : vector<16x128xf32>
    %c0_17 = arith.constant 0 : index
    %c0_18 = arith.constant 0 : index
    %20 = vector.load %arg6[%c0_17, %c0_18] : memref<16x128xf32, #tpu.memory_space<vmem>>, vector<16x128xf32>
    tpu.vector_store %arg6[%c0_17, %c0_18], %19 {strides = array<i32>} : memref<16x128xf32, #tpu.memory_space<vmem>>, vector<16x128xf32>,
    return
  }
}

</mosaic_0001>

<bundles_post_ra>
// kernel: tpu_custom_call.1
= control target key start
LH: loop header
LB: loop body
LE: loop exit
PB: predicated region body
PF: predicated region fallthrough
CT: control target
= control target key end

     0   :  { %11 = vsyncpa [#allocation3], 0  ;;  %s840_s0 = inlined_call_operand.hbm [shape: bf16[16,16], index: 0, kind: input, shape index: {}]   ;;  %s841_s1 = inlined_call_operand.hbm [shape: bf16[16,128], index: 1, kind: input, shape index: {}]   ;;  %s842_s2 = inlined_call_operand.hbm [shape: bf16[128,128], index: 2, kind: input, shape index: {}]   ;;  %s843_s3 = inlined_call_operand.vmem [shape: f32[1,128], index: 3, kind: input, shape index: {}]   ;;  %s844_s4 = inlined_call_operand.hbm [shape: bf16[128,128], index: 4, kind: input, shape index: {}]   ;;  %s845_s5 = inlined_call_operand.vmem [shape: f32[1,128], index: 5, kind: input, shape index: {}]   ;;  %s846_s6 = inlined_call_operand.hbm [shape: f32[16,128], index: 6, kind: output, shape index: {}]  }
   0x1   :  { %12 = vsyncpa [#allocation6], 0 }
   0x2   :  { %13 = vsyncpa [#allocation9], 0 }
   0x3   :  { %14 = vsyncpa [#allocation4], 0  ;;  %s674_s21 = smov [#allocation5]   ;;  %s675_s23 = smov [#allocation2]  }
   0x4   :  { %s32_s22 = sshll.u32 %s674_s21, 4  ;;  %s20_s24 = sshll.u32 %s675_s23, 4  ;;  %s33_s22 = int_to_ptr.vmem [resolvable:$true] %s32_s22  ;;  %s720_s24 = int_to_ptr.vmem [resolvable:$true] %s20_s24 }
   0x5   :  { %s556_s27 = scalar_lea.hbm %s841_s1, 128 }
   0x6   :  { %p557_p0 = scmp.ne.s32.totalorder %s841_s1, %s556_s27  ;;  %p560_p1 = scmp.lt.u32.totalorder %s556_s27, %s841_s1 }
   0x8   :  { %p562_p2 = pnand %p560_p1, %p557_p0 }
   0xa   :  { %565 = shalt.err (!%p562_p2)
}
   0xb   :  { %s566_s8 = scalar_lea.vmem %s33_s22, 128  ;;  %p571_p4 = scmp.lt.s32.totalorder %s33_s22, %s33_s22 }
   0xc   :  { %p567_p3 = scmp.ne.s32.totalorder %s33_s22, %s566_s8  ;;  %p572_p5 = scmp.lt.s32.totalorder %s566_s8, %s566_s8 }
   0xe   :  { %p573_p6 = por %p572_p5, %p571_p4 }
  0x10   :  { %p574_p7 = pnand %p573_p6, %p567_p3 }
  0x12   :  { %577 = shalt.err (!%p574_p7)
}
  0x13   :  { %s676_s9 = smov 64   ;;  %s677_s10 = smov 4  }
  0x14   :  { %38 = dma.hbm_to_vmem [thread:$0]  %s841_s1, 128, %s33_s22, [#allocation6], %s676_s9, %s676_s9, %s677_s10  }
  0x15   :  { %s578_s15 = scalar_lea.hbm %s840_s0, 128 }
  0x16   :  { %p579_p8 = scmp.ne.s32.totalorder %s840_s0, %s578_s15  ;;  %p582_p9 = scmp.lt.u32.totalorder %s578_s15, %s840_s0 }
  0x18   :  { %p584_p10 = pnand %p582_p9, %p579_p8 }
  0x1a   :  { %587 = shalt.err (!%p584_p10)
}
  0x1b   :  { %s588_s20 = scalar_lea.vmem %s720_s24, 128  ;;  %p593_p12 = scmp.lt.s32.totalorder %s720_s24, %s720_s24 }
  0x1c   :  { %p589_p11 = scmp.ne.s32.totalorder %s720_s24, %s588_s20  ;;  %p594_p13 = scmp.lt.s32.totalorder %s588_s20, %s588_s20 }
  0x1e   :  { %p595_p0 = por %p594_p13, %p593_p12 }
  0x20   :  { %p596_p1 = pnand %p595_p0, %p589_p11 }
  0x22   :  { %599 = shalt.err (!%p596_p1)
}
  0x23   :  { %26 = dma.hbm_to_vmem [thread:$0]  %s840_s0, 128, %s720_s24, [#allocation3], %s676_s9, %s676_s9, %s677_s10  }
  0x24   :  { %s678_s22 = smov [#allocation7]   ;;  %s679_s25 = smov [#allocation8]  }
  0x25   :  { %s44_s23 = sshll.u32 %s678_s22, 4  ;;  %s58_s26 = sshll.u32 %s679_s25, 4  ;;  %s45_s23 = int_to_ptr.vmem [resolvable:$true] %s44_s23  ;;  %s757_s26 = int_to_ptr.vmem [resolvable:$true] %s58_s26 }
  0x26   :  { %s600_s29 = scalar_lea.hbm %s842_s2, 1024 }
  0x27   :  { %p601_p2 = scmp.ne.s32.totalorder %s842_s2, %s600_s29  ;;  %p604_p3 = scmp.lt.u32.totalorder %s600_s29, %s842_s2 }
  0x29   :  { %p606_p4 = pnand %p604_p3, %p601_p2 }
  0x2b   :  { %609 = shalt.err (!%p606_p4)
}
  0x2c   :  { %s610_s0 = scalar_lea.vmem %s45_s23, 1024  ;;  %p615_p6 = scmp.lt.s32.totalorder %s45_s23, %s45_s23 }
  0x2d   :  { %p611_p5 = scmp.ne.s32.totalorder %s45_s23, %s610_s0  ;;  %p616_p7 = scmp.lt.s32.totalorder %s610_s0, %s610_s0 }
  0x2f   :  { %p617_p8 = por %p616_p7, %p615_p6 }
  0x31   :  { %p618_p9 = pnand %p617_p8, %p611_p5 }
  0x33   :  { %621 = shalt.err (!%p618_p9)
}
  0x34   :  { %50 = dma.hbm_to_vmem [thread:$0]  %s842_s2, 1024, %s45_s23, [#allocation6], %s676_s9, %s676_s9, %s677_s10  }
  0x35   :  { %s622_s15 = scalar_lea.hbm %s844_s4, 1024 }
  0x36   :  { %p623_p10 = scmp.ne.s32.totalorder %s844_s4, %s622_s15  ;;  %p626_p11 = scmp.lt.u32.totalorder %s622_s15, %s844_s4 }
  0x38   :  { %p628_p12 = pnand %p626_p11, %p623_p10 }
  0x3a   :  { %631 = shalt.err (!%p628_p12)
}
  0x3b   :  { %s632_s20 = scalar_lea.vmem %s757_s26, 1024  ;;  %p637_p0 = scmp.lt.s32.totalorder %s757_s26, %s757_s26 }
  0x3c   :  { %p633_p13 = scmp.ne.s32.totalorder %s757_s26, %s632_s20  ;;  %p638_p1 = scmp.lt.s32.totalorder %s632_s20, %s632_s20 }
  0x3e   :  { %p639_p2 = por %p638_p1, %p637_p0 }
  0x40   :  { %p640_p3 = pnand %p639_p2, %p633_p13 }
  0x42   :  { %643 = shalt.err (!%p640_p3)
}
  0x43   :  { %64 = dma.hbm_to_vmem [thread:$0]  %s844_s4, 1024, %s757_s26, [#allocation9], %s676_s9, %s676_s9, %s677_s10  }
  0x44   :  { %666 = dma.done.wait [#allocation3], 128  }
  0x45   :  { %667 = vsyncadd [#allocation3], 4294967168 }
  0x46   :  { %668 = dma.done.wait [#allocation6], 1152  }
  0x47   :  { %669 = vsyncadd [#allocation6], 4294966144 }
  0x48   :  { %670 = dma.done.wait [#allocation9], 1024  }
  0x49   :  { %671 = vsyncadd [#allocation9], 4294966272  ;;  %v680_v0 = vmov 0.0   ;;  %vm681_vm0 = vmmov 0   ;;  %v538_v1 = vld [vmem:[#allocation7] sm:$0xff]   ;;  %v539_v2 = vld [vmem:[#allocation7 + $0x8] sm:$0xff]  }
  0x4a   :  { %475 = vmatprep.subr.bf16.mxu0 %v680_v0  ;;  %491 = vmatprep.mubr.msk.bf16.mxu0 %vm681_vm0, %v680_v0  ;;  %v540_v3 = vld [vmem:[#allocation7 + $0x10] sm:$0xff]   ;;  %v541_v4 = vld [vmem:[#allocation7 + $0x18] sm:$0xff]   ;;  %v542_v5 = vld [vmem:[#allocation7 + $0x20] sm:$0xff]   ;;  %vm208_vm1 = vcmask 130048   ;;  %s682_s21 = smov [#allocation10]  }
  0x4b   :  { %495 = vmatprep.subr.bf16.mxu1 %v680_v0  ;;  %497 = vmatprep.mubr.msk.bf16.mxu1 %vm681_vm0, %v680_v0  ;;  %v543_v6 = vld [vmem:[#allocation7 + $0x28] sm:$0xff]   ;;  %v544_v7 = vld [vmem:[#allocation7 + $0x30] sm:$0xff]   ;;  %v545_v8 = vld [vmem:[#allocation7 + $0x38] sm:$0xff]   ;;  %s417_s22 = sshll.u32 %s682_s21, 4  ;;  %s418_s22 = int_to_ptr.vmem [resolvable:$true] %s417_s22 }
  0x4c   :  { %476 = vmatpush3.bf16.msra.mxu0 %v538_v1  ;;  %v546_v9 = vld [vmem:[#allocation5] sm:$0xff]   ;;  %v547_v15 = vld [vmem:[#allocation2] sm:$0xff]   ;;  %v548_v16 = vld [vmem:[#allocation8] sm:$0xff]   ;;  %s644_s23 = scalar_lea.vmem %s418_s22, 256  ;;  %p649_p5 = scmp.lt.s32.totalorder %s418_s22, %s418_s22 }
  0x4d   :  { %477 = vmatprep.subr.bf16.mxu0 %v680_v0  ;;  %v549_v17 = vld [vmem:[#allocation8 + $0x8] sm:$0xff]   ;;  %v550_v18 = vld [vmem:[#allocation8 + $0x10] sm:$0xff]   ;;  %v551_v19 = vld [vmem:[#allocation8 + $0x18] sm:$0xff]   ;;  %p645_p4 = scmp.ne.s32.totalorder %s418_s22, %s644_s23  ;;  %p650_p6 = scmp.lt.s32.totalorder %s644_s23, %s644_s23 }
  0x4e   :  { %v552_v20 = vld [vmem:[#allocation8 + $0x20] sm:$0xff]   ;;  %v553_v21 = vld [vmem:[#allocation8 + $0x28] sm:$0xff]   ;;  %v554_v22 = vld [vmem:[#allocation8 + $0x30] sm:$0xff]  }
  0x4f   :  { %v555_v23 = vld [vmem:[#allocation8 + $0x38] sm:$0xff]   ;;  %v440_v24 = vld [vmem:[%s843_s3] ss:$0 sm:$0xff]  ;;  %p651_p7 = por %p650_p6, %p649_p5 }
  0x50   :  { %478 = vmatpush3.bf16.msra.mxu0 %v539_v2  ;;  %v451_v39 = vld [vmem:[%s845_s5] ss:$0 sm:$0xff] }
  0x51   :  { %479 = vmatprep.subr.bf16.mxu0 %v680_v0  ;;  %p652_p8 = pnand %p651_p7, %p645_p4 }
  0x54   :  { %480 = vmatpush3.bf16.msra.mxu0 %v540_v3 }
  0x55   :  { %481 = vmatprep.subr.bf16.mxu0 %v680_v0 }
  0x58   :  { %482 = vmatpush3.bf16.msra.mxu0 %v541_v4 }
  0x59   :  { %483 = vmatprep.subr.bf16.mxu0 %v680_v0 }
  0x5c   :  { %484 = vmatpush3.bf16.msra.mxu0 %v542_v5 }
  0x5d   :  { %485 = vmatprep.subr.bf16.mxu0 %v680_v0 }
  0x60   :  { %486 = vmatpush3.bf16.msra.mxu0 %v543_v6 }
  0x61   :  { %487 = vmatprep.subr.bf16.mxu0 %v680_v0 }
  0x64   :  { %488 = vmatpush3.bf16.msra.mxu0 %v544_v7 }
  0x65   :  { %489 = vmatprep.subr.bf16.mxu0 %v680_v0 }
  0x68   :  { %490 = vmatpush3.bf16.msra.mxu0 %v545_v8 }
  0x69   :  { %521 = vmatprep.subr.bf16.mxu0 %v680_v0 }
  0x6b   :  { %492 = vmatmul.mubr.bf16.vlgmr.msra.gmra.mrb[0].mxu0 %v546_v9 }
  0x6c   :  { %523 = vmatprep.mubr.msk.bf16.mxu0 %vm681_vm0, %v680_v0 }
 0x13e   :  { %v186_v10 = vpop.f32.mrb[0].mxu0 }
 0x13f   :  { %v493_v11 = vpop.f32.mrb[1].mxu0 }
 0x140   :  { %v189_v12 = vpop.f32.mrb[2].mxu0 }
 0x141   :  { %v195_v13 = vpack.c.bf16 %v189_v12, %v186_v10  ;;  %v494_v14 = vpop.f32.mrb[3].mxu0 }
 0x143   :  { %496 = vmatpush3.bf16.msra.mxu1 %v195_v13 }
 0x144   :  { %501 = vmatprep.subr.bf16.mxu1 %v680_v0 }
 0x146   :  { %498 = vmatmul.mubr.msk.bf16.vlgmr.msra.gmra.mrb[0].mxu1 %vm208_vm1, %v547_v15 }
 0x147   :  { %502 = vmatpush3.bf16.msra.mxu1 %v548_v16  ;;  %517 = vmatprep.mubr.msk.bf16.mxu1 %vm681_vm0, %v680_v0 }
 0x148   :  { %503 = vmatprep.subr.bf16.mxu1 %v680_v0 }
 0x14b   :  { %504 = vmatpush3.bf16.msra.mxu1 %v549_v17 }
 0x14c   :  { %505 = vmatprep.subr.bf16.mxu1 %v680_v0 }
 0x14f   :  { %506 = vmatpush3.bf16.msra.mxu1 %v550_v18 }
 0x150   :  { %507 = vmatprep.subr.bf16.mxu1 %v680_v0 }
 0x153   :  { %508 = vmatpush3.bf16.msra.mxu1 %v551_v19 }
 0x154   :  { %509 = vmatprep.subr.bf16.mxu1 %v680_v0 }
 0x157   :  { %510 = vmatpush3.bf16.msra.mxu1 %v552_v20 }
 0x158   :  { %511 = vmatprep.subr.bf16.mxu1 %v680_v0 }
 0x15b   :  { %512 = vmatpush3.bf16.msra.mxu1 %v553_v21 }
 0x15c   :  { %513 = vmatprep.subr.bf16.mxu1 %v680_v0 }
 0x15f   :  { %514 = vmatpush3.bf16.msra.mxu1 %v554_v22 }
 0x160   :  { %515 = vmatprep.subr.bf16.mxu1 %v680_v0 }
 0x163   :  { %516 = vmatpush3.bf16.msra.mxu1 %v555_v23 }
 0x219   :  { %v246_v25 = vpop.f32.mrb[0].mxu1 }
 0x21a   :  { %v247_v26 = vadd.f32 %v440_v24, %v246_v25  ;;  %v499_v27 = vpop.f32.mrb[1].mxu1 }
 0x21b   :  { %v249_v28 = vpop.f32.mrb[2].mxu1 }
 0x21c   :  { %v250_v29 = vadd.f32 %v440_v24, %v249_v28  ;;  %v500_v30 = vpop.f32.mrb[3].mxu1  ;;  %v253_v31 = vmax.f32 %v247_v26, 0.0 }
 0x21e   :  { %v254_v32 = vmax.f32 %v250_v29, 0.0 }
 0x220   :  { %v255_v33 = vpack.c.bf16 %v254_v32, %v253_v31 }
 0x222   :  { %518 = vmatmul.mubr.bf16.vlgmr.msra.gmra.mrb[4].mxu1 %v255_v33 }
 0x2f5   :  { %v354_v34 = vpop.f32.mrb[4].mxu1 }
 0x2f6   :  { %v519_v35 = vpop.f32.mrb[5].mxu1 }
 0x2f7   :  { %v357_v36 = vpop.f32.mrb[6].mxu1 }
 0x2f8   :  { %v361_v37 = vpack.c.bf16 %v357_v36, %v354_v34  ;;  %v520_v38 = vpop.f32.mrb[7].mxu1 }
 0x2fa   :  { %522 = vmatpush3.bf16.msra.mxu0 %v361_v37 }
 0x2fd   :  { %524 = vmatmul.mubr.msk.bf16.vlgmr.msra.gmra.mrb[4].mxu0 %vm208_vm1, %v547_v15 }
 0x3d0   :  { %v403_v40 = vpop.f32.mrb[4].mxu0 }
 0x3d1   :  { %v404_v41 = vadd.f32 %v451_v39, %v403_v40  ;;  %v525_v42 = vpop.f32.mrb[5].mxu0 }
 0x3d2   :  { %v406_v43 = vpop.f32.mrb[6].mxu0 }
 0x3d3   :  { %410 = vst [vmem:[#allocation10] sm:$0xff] %v404_v41  ;;  %v407_v44 = vadd.f32 %v451_v39, %v406_v43  ;;  %v526_v45 = vpop.f32.mrb[7].mxu0 }
 0x3d5   :  { %411 = vst [vmem:[#allocation10 + $0x8] sm:$0xff] %v407_v44 }
 0x3d6   :  { %655 = shalt.err (!%p652_p8)
}
 0x3d7   :  { %s656_s26 = scalar_lea.hbm %s846_s6, 256 }
 0x3d8   :  { %p657_p9 = scmp.ne.s32.totalorder %s846_s6, %s656_s26  ;;  %p660_p10 = scmp.lt.u32.totalorder %s656_s26, %s846_s6 }
 0x3da   :  { %p662_p11 = pnand %p660_p10, %p657_p9 }
 0x3dc   :  { %665 = shalt.err (!%p662_p11)
}
 0x3dd   :  { %s683_s7 = smov 128   ;;  %s684_s8 = smov 8  }
 0x3de   :  { %423 = dma.vmem_to_hbm [thread:$0]  %s418_s22, 256, %s846_s6, [#allocation4], %s683_s7, %s683_s7, %s684_s8  }
 0x3df   :  { %672 = dma.done.wait [#allocation4], 256  }
 0x3e0   :  { %673 = vsyncadd [#allocation4], 4294967040 }
 0x3e1   :  { %427 = vsyncpa [#allocation3], 1 }
 0x3e2   :  { %428 = vsyncpa [#allocation6], 1 }
 0x3e3   :  { %429 = vsyncpa [#allocation9], 1 }
 0x3e4   :  { %430 = vsyncpa [#allocation4], 1 }

</bundles_post_ra>
